<compile_context>
chip_gen: v6e
topology: v6e:2x2x1
jax: 0.10.0
libtpu: 0.0.40
codegen_flags: <defaults>
</compile_context>

<pallas_src>
import math
import jax
import jax.numpy as jnp
from jax.experimental import pallas as pl
from jax.experimental.pallas import tpu as pltpu


def ffn_kernel(x_ref, w1_ref, b1_ref, w2_ref, b2_ref, o_ref, acc_ref):
    # x_ref:  (tm, d_model)   input dtype (cast to bf16 in-kernel)
    # w1_ref: (d_model, th)   bf16     b1_ref: (1, th)      f32
    # w2_ref: (th, d_model)   bf16     b2_ref: (1, d_model) f32
    # o_ref:  (tm, d_model)   output dtype
    # acc_ref:(tm, d_model)   f32 VMEM scratch, lives across the hidden (k) axis
    k = pl.program_id(1)

    # In-kernel bf16 cast of the activation tile (VPU work, hidden under the MXU).
    x_bf = x_ref[...].astype(jnp.bfloat16)

    # First matmul (MXU, bf16 in / f32 acc) + bias + ReLU for this hidden slab.
    h = jnp.dot(x_bf, w1_ref[...], preferred_element_type=jnp.float32)
    h = jnp.maximum(h + b1_ref[...], 0.0)          # F.relu_ ; dropout1 = identity (eval)

    # Second matmul against the matching W2 row slab.
    partial = jnp.dot(h.astype(jnp.bfloat16), w2_ref[...],
                      preferred_element_type=jnp.float32)

    @pl.when(k == 0)
    def _():
        acc_ref[...] = partial                     # first slab: no memset + read-add pass

    @pl.when(k > 0)
    def _():
        acc_ref[...] += partial

    @pl.when(k == pl.num_programs(1) - 1)
    def _():
        # dropout2 = identity (eval)
        o_ref[...] = (acc_ref[...] + b2_ref[...]).astype(o_ref.dtype)


def _round_up(x, m):
    return ((x + m - 1) // m) * m


def _pick_row_tile(M, tm_target):
    """Large, sublane-aligned row tile; >= 2 tiles when M allows; bounded zero-padding."""
    M8 = _round_up(M, 8)
    if M8 <= 8:
        return 8
    # Enough tiles so tm <= tm_target, and at least 2 so v7x's second TensorCore gets work.
    n_tiles = max(2, -(-M8 // tm_target))
    return _round_up(-(-M8 // n_tiles), 8)


def _pick_hidden_tile(hidden, th_target):
    """Lane-aligned hidden slab.  Prefer a 128-multiple divisor of `hidden`; otherwise pad
    `hidden` up to a multiple of the slab (never fall back to one huge full-hidden block)."""
    if hidden <= th_target:
        return hidden, hidden
    cand = (th_target // 128) * 128
    while cand >= 128:
        if hidden % cand == 0:
            return cand, hidden
        cand -= 128
    th = min(_round_up(th_target, 128), _round_up(hidden, 128))
    return th, _round_up(hidden, th)


def _vmem_bytes(tm, th, d_model, x_itemsize, out_itemsize):
    """Double-buffered working-set estimate (inputs/outputs x2, scratch x1)."""
    return (2 * tm * d_model * x_itemsize          # x tiles
            + 2 * d_model * th * 2                 # W1 slabs (bf16)
            + 2 * th * d_model * 2                 # W2 slabs (bf16)
            + 2 * 8 * th * 4                       # b1 slabs (f32, sublane-padded)
            + 2 * 8 * d_model * 4                  # b2 (f32, sublane-padded)
            + 2 * tm * d_model * out_itemsize      # output tiles
            + tm * d_model * 4)                    # f32 accumulator scratch


def feed_forward_layer(x, w1, b1, w2, b2, *, tm=512, th=1024,
                       vmem_budget_bytes=56 * 1024 * 1024):
    """Eval-mode FeedForwardLayer: relu(x @ w1 + b1) @ w2 + b2 (bf16 MXU, f32 accumulation).

    x: (..., d_model); w1: (d_model, hidden); w2: (hidden, d_model).
    Returns an array with x's shape and dtype.  Dropout = identity (inference).
    """
    d_model = x.shape[-1]
    hidden = w1.shape[1]
    orig_shape = x.shape
    out_dtype = x.dtype
    x_isz = x.dtype.itemsize
    o_isz = out_dtype.itemsize

    x2d = x.reshape(-1, d_model)
    M = x2d.shape[0]

    tm = _pick_row_tile(M, tm)
    th, hidden_pad = _pick_hidden_tile(hidden, th)

    # Clamp tiles so the double-buffered working set leaves headroom on v7x (64 MiB / TC).
    while _vmem_bytes(tm, th, d_model, x_isz, o_isz) > vmem_budget_bytes and tm > 256:
        tm = max(8, _round_up(tm // 2, 8))
    while (_vmem_bytes(tm, th, d_model, x_isz, o_isz) > vmem_budget_bytes
           and th >= 256 and th % 256 == 0 and hidden_pad % (th // 2) == 0):
        th = th // 2

    M_pad = _round_up(M, tm)
    if M_pad != M:
        x2d = jnp.pad(x2d, ((0, M_pad - M), (0, 0)))

    # Weights persist in bf16 (MXU input dtype); biases in f32 (v5e VPU has no bf16).
    w1_bf = w1.astype(jnp.bfloat16)
    w2_bf = w2.astype(jnp.bfloat16)
    b1_2d = b1.reshape(1, hidden).astype(jnp.float32)
    b2_2d = b2.reshape(1, d_model).astype(jnp.float32)
    if hidden_pad != hidden:
        # Zero-padded hidden units: relu(x @ 0 + 0) = 0 and contribute 0 through W2.
        w1_bf = jnp.pad(w1_bf, ((0, 0), (0, hidden_pad - hidden)))
        b1_2d = jnp.pad(b1_2d, ((0, 0), (0, hidden_pad - hidden)))
        w2_bf = jnp.pad(w2_bf, ((0, hidden_pad - hidden), (0, 0)))

    n_rows = M_pad // tm
    n_k = hidden_pad // th
    grid = (n_rows, n_k)

    # Honest cost hint: W1/W2/biases are re-streamed once per row tile under slab streaming.
    flops = 4 * M_pad * d_model * hidden_pad
    bytes_accessed = (
        x2d.size * x_isz
        + n_rows * (w1_bf.size + w2_bf.size) * 2
        + n_rows * (b1_2d.size + b2_2d.size) * 4
        + M_pad * d_model * o_isz)

    vmem_need = _vmem_bytes(tm, th, d_model, x_isz, o_isz)
    vmem_limit = int(min(max(vmem_need + 8 * 1024 * 1024, 32 * 1024 * 1024),
                         64 * 1024 * 1024))

    out = pl.pallas_call(
        ffn_kernel,
        out_shape=jax.ShapeDtypeStruct((M_pad, d_model), out_dtype),
        grid_spec=pltpu.PrefetchScalarGridSpec(
            num_scalar_prefetch=0,
            grid=grid,
            in_specs=[
                pl.BlockSpec((tm, d_model), lambda i, k: (i, 0)),     # x row tile
                pl.BlockSpec((d_model, th), lambda i, k: (0, k)),     # W1 column slab
                pl.BlockSpec((1, th), lambda i, k: (0, k)),           # b1 slab
                pl.BlockSpec((th, d_model), lambda i, k: (k, 0)),     # W2 row slab
                pl.BlockSpec((1, d_model), lambda i, k: (0, 0)),      # b2 (constant)
            ],
            out_specs=pl.BlockSpec((tm, d_model), lambda i, k: (i, 0)),
            scratch_shapes=[pltpu.VMEM((tm, d_model), jnp.float32)],
        ),
        compiler_params=pltpu.CompilerParams(
            dimension_semantics=("parallel", "arbitrary"),
            vmem_limit_bytes=vmem_limit,
        ),
        cost_estimate=pl.CostEstimate(
            flops=flops, transcendentals=0, bytes_accessed=bytes_accessed),
    )(x2d, w1_bf, b1_2d, w2_bf, b2_2d)

    return out[:M].reshape(orig_shape)


def init_params(key, d_model, r_ff):
    hidden = d_model * r_ff
    k1, k2 = jax.random.split(key)
    # linear1: kaiming_normal_(nonlinearity='relu'), fan_in = d_model -> std = sqrt(2 / d_model)
    std1 = math.sqrt(2.0 / d_model)
    w1 = std1 * jax.random.normal(k1, (d_model, hidden), dtype=jnp.float32)   # stored (in, out)
    b1 = jnp.zeros((hidden,), dtype=jnp.float32)
    # linear2: xavier_uniform_, limit = sqrt(6 / (hidden + d_model))
    limit2 = math.sqrt(6.0 / (hidden + d_model))
    w2 = jax.random.uniform(k2, (hidden, d_model), dtype=jnp.float32,
                            minval=-limit2, maxval=limit2)                    # stored (in, out)
    b2 = jnp.zeros((d_model,), dtype=jnp.float32)
    return w1, b1, w2, b2


if __name__ == "__main__":
    # Small but lane-dense demo shapes: d_model multiple of 128 keeps output stores unmasked.
    d_model, r_ff = 128, 4
    batch, seq = 2, 8

    key = jax.random.PRNGKey(0)
    kx, kp = jax.random.split(key)
    x = jax.random.normal(kx, (batch, seq, d_model), dtype=jnp.float32)
    w1, b1, w2, b2 = init_params(kp, d_model, r_ff)

    out = feed_forward_layer(x, w1, b1, w2, b2)
    out = jax.block_until_ready(out)

    # Reference in plain f32 JAX (eval-mode dropout = identity). Tolerance is loosened because
    # the kernel uses bf16 MXU inputs with f32 accumulation.
    ref = jnp.maximum(x.reshape(-1, d_model) @ w1 + b1, 0.0) @ w2 + b2
    ref = ref.reshape(batch, seq, d_model)
    assert out.shape == x.shape
    assert jnp.allclose(out, ref, atol=5e-2, rtol=5e-2), \
        f"max abs err {jnp.max(jnp.abs(out - ref))}"

    print("KERNEL_OK")
</pallas_src>

<mosaic_0001>
module attributes {stable_mosaic.version = 11 : i64} {
  func.func @ffn_kernel(%arg0: i32, %arg1: i32, %arg2: memref<8x128xf32, #tpu.memory_space<vmem>>, %arg3: memref<128x512xbf16, #tpu.memory_space<vmem>>, %arg4: memref<1x512xf32, #tpu.memory_space<vmem>>, %arg5: memref<512x128xbf16, #tpu.memory_space<vmem>>, %arg6: memref<1x128xf32, #tpu.memory_space<vmem>>, %arg7: memref<8x128xf32, #tpu.memory_space<vmem>>, %arg8: memref<8x128xf32, #tpu.memory_space<vmem>>) attributes {dimension_semantics = [#tpu.dimension_semantics<parallel>, #tpu.dimension_semantics<arbitrary>], iteration_bounds = array<i64: 2, 1>, scalar_prefetch = 0 : i64, scratch_operands = 1 : i64, tpu.core_type = #tpu.core_type<tc>, window_params = [{transform_indices = @transform_0, window_bounds = array<i64: 8, 128>}, {transform_indices = @transform_1, window_bounds = array<i64: 128, 512>}, {transform_indices = @transform_2, window_bounds = array<i64: 1, 512>}, {transform_indices = @transform_3, window_bounds = array<i64: 512, 128>}, {pipeline_mode = #tpu.pipeline_mode<synchronous>, transform_indices = @transform_4, window_bounds = array<i64: 1, 128>}, {transform_indices = @transform_5, window_bounds = array<i64: 8, 128>}]} {
    %c0 = arith.constant 0 : index
    %c0_0 = arith.constant 0 : index
    %0 = vector.load %arg2[%c0, %c0_0] : memref<8x128xf32, #tpu.memory_space<vmem>>, vector<8x128xf32>
    %1 = arith.truncf %0 : vector<8x128xf32> to vector<8x128xbf16>
    %c0_1 = arith.constant 0 : index
    %c0_2 = arith.constant 0 : index
    %2 = vector.load %arg3[%c0_1, %c0_2] : memref<128x512xbf16, #tpu.memory_space<vmem>>, vector<128x512xbf16>
    %cst = arith.constant dense<0.000000e+00> : vector<8x512xf32>
    %3 = tpu.matmul %1, %2, %cst {dimension_numbers = #tpu.dot_dimension_numbers<[1], [0], [0], [1], [0, 0, 1, 1], [], []>} : vector<8x128xbf16>, vector<128x512xbf16>, vector<8x512xf32> -> vector<8x512xf32>
    %c0_3 = arith.constant 0 : index
    %c0_4 = arith.constant 0 : index
    %4 = vector.load %arg4[%c0_3, %c0_4] : memref<1x512xf32, #tpu.memory_space<vmem>>, vector<1x512xf32>
    %5 = vector.broadcast %4 : vector<1x512xf32> to vector<8x512xf32>
    %6 = arith.addf %3, %5 : vector<8x512xf32>
    %cst_5 = arith.constant 0.000000e+00 : f32
    %7 = vector.broadcast %cst_5 : f32 to vector<8x512xf32>
    %8 = arith.maximumf %6, %7 : vector<8x512xf32>
    %9 = arith.truncf %8 : vector<8x512xf32> to vector<8x512xbf16>
    %c0_6 = arith.constant 0 : index
    %c0_7 = arith.constant 0 : index
    %10 = vector.load %arg5[%c0_6, %c0_7] : memref<512x128xbf16, #tpu.memory_space<vmem>>, vector<512x128xbf16>
    %cst_8 = arith.constant dense<0.000000e+00> : vector<8x128xf32>
    %11 = tpu.matmul %9, %10, %cst_8 {dimension_numbers = #tpu.dot_dimension_numbers<[1], [0], [0], [1], [0, 0, 1, 1], [], []>} : vector<8x512xbf16>, vector<512x128xbf16>, vector<8x128xf32> -> vector<8x128xf32>
    %c0_i32 = arith.constant 0 : i32
    %12 = arith.cmpi eq, %arg1, %c0_i32 : i32
    %13 = arith.extui %12 : i1 to i32
    %c0_i32_9 = arith.constant 0 : i32
    %14 = arith.cmpi ne, %13, %c0_i32_9 : i32
    scf.if %14 {
      %c0_14 = arith.constant 0 : index
      %c0_15 = arith.constant 0 : index
      %21 = vector.load %arg8[%c0_14, %c0_15] : memref<8x128xf32, #tpu.memory_space<vmem>>, vector<8x128xf32>
      tpu.vector_store %arg8[%c0_14, %c0_15], %11 {strides = array<i32>} : memref<8x128xf32, #tpu.memory_space<vmem>>, vector<8x128xf32>,
    } else {
    }
    %c0_i32_10 = arith.constant 0 : i32
    %15 = arith.cmpi sgt, %arg1, %c0_i32_10 : i32
    %16 = arith.extui %15 : i1 to i32
    %c0_i32_11 = arith.constant 0 : i32
    %17 = arith.cmpi ne, %16, %c0_i32_11 : i32
    scf.if %17 {
      %c0_14 = arith.constant 0 : index
      %c0_15 = arith.constant 0 : index
      %21 = vector.load %arg8[%c0_14, %c0_15] : memref<8x128xf32, #tpu.memory_space<vmem>>, vector<8x128xf32>
      %22 = arith.addf %21, %11 : vector<8x128xf32>
      %c0_16 = arith.constant 0 : index
      %c0_17 = arith.constant 0 : index
      %23 = vector.load %arg8[%c0_16, %c0_17] : memref<8x128xf32, #tpu.memory_space<vmem>>, vector<8x128xf32>
      tpu.vector_store %arg8[%c0_16, %c0_17], %22 {strides = array<i32>} : memref<8x128xf32, #tpu.memory_space<vmem>>, vector<8x128xf32>,
    } else {
    }
    %c0_i32_12 = arith.constant 0 : i32
    %18 = arith.cmpi eq, %arg1, %c0_i32_12 : i32
    %19 = arith.extui %18 : i1 to i32
    %c0_i32_13 = arith.constant 0 : i32
    %20 = arith.cmpi ne, %19, %c0_i32_13 : i32
    scf.if %20 {
      %c0_14 = arith.constant 0 : index
      %c0_15 = arith.constant 0 : index
      %21 = vector.load %arg8[%c0_14, %c0_15] : memref<8x128xf32, #tpu.memory_space<vmem>>, vector<8x128xf32>
      %c0_16 = arith.constant 0 : index
      %c0_17 = arith.constant 0 : index
      %22 = vector.load %arg6[%c0_16, %c0_17] : memref<1x128xf32, #tpu.memory_space<vmem>>, vector<1x128xf32>
      %23 = vector.broadcast %22 : vector<1x128xf32> to vector<8x128xf32>
      %24 = arith.addf %21, %23 : vector<8x128xf32>
      %c0_18 = arith.constant 0 : index
      %c0_19 = arith.constant 0 : index
      %25 = vector.load %arg7[%c0_18, %c0_19] : memref<8x128xf32, #tpu.memory_space<vmem>>, vector<8x128xf32>
      tpu.vector_store %arg7[%c0_18, %c0_19], %24 {strides = array<i32>} : memref<8x128xf32, #tpu.memory_space<vmem>>, vector<8x128xf32>,
    } else {
    }
    return
  }
  func.func @transform_0(%arg0: i32, %arg1: i32) -> (i32, i32) {
    %c0_i32 = arith.constant 0 : i32
    %c0_i32_0 = arith.constant 0 : i32
    return %arg0, %c0_i32 : i32, i32
  }
  func.func @transform_1(%arg0: i32, %arg1: i32) -> (i32, i32) {
    %c0_i32 = arith.constant 0 : i32
    %c0_i32_0 = arith.constant 0 : i32
    return %c0_i32, %arg1 : i32, i32
  }
  func.func @transform_2(%arg0: i32, %arg1: i32) -> (i32, i32) {
    %c0_i32 = arith.constant 0 : i32
    %c0_i32_0 = arith.constant 0 : i32
    return %c0_i32, %arg1 : i32, i32
  }
  func.func @transform_3(%arg0: i32, %arg1: i32) -> (i32, i32) {
    %c0_i32 = arith.constant 0 : i32
    %c0_i32_0 = arith.constant 0 : i32
    return %arg1, %c0_i32 : i32, i32
  }
  func.func @transform_4(%arg0: i32, %arg1: i32) -> (i32, i32) {
    %c0_i32 = arith.constant 0 : i32
    %c0_i32_0 = arith.constant 0 : i32
    %c0_i32_1 = arith.constant 0 : i32
    return %c0_i32, %c0_i32_0 : i32, i32
  }
  func.func @transform_5(%arg0: i32, %arg1: i32) -> (i32, i32) {
    %c0_i32 = arith.constant 0 : i32
    %c0_i32_0 = arith.constant 0 : i32
    return %arg0, %c0_i32 : i32, i32
  }
}

</mosaic_0001>

<bundles_post_ra>
// kernel: tpu_custom_call.1
= control target key start
LH: loop header
LB: loop body
LE: loop exit
PB: predicated region body
PF: predicated region fallthrough
CT: control target
= control target key end

     0   :  { %s1854_s0 = inlined_call_operand.hbm [shape: f32[16,128], index: 0, kind: input, shape index: {}]   ;;  %s1855_s1 = inlined_call_operand.hbm [shape: bf16[128,512], index: 1, kind: input, shape index: {}]   ;;  %s1856_s2 = inlined_call_operand.hbm [shape: f32[1,512], index: 2, kind: input, shape index: {}]   ;;  %s1857_s3 = inlined_call_operand.hbm [shape: bf16[512,128], index: 3, kind: input, shape index: {}]   ;;  %s1858_s4 = inlined_call_operand.vmem [shape: f32[1,128], index: 4, kind: input, shape index: {}]   ;;  %s1859_s5 = inlined_call_operand.hbm [shape: f32[16,128], index: 5, kind: output, shape index: {}]  }
   0x1   :  { %1864 = sst [smem:[#allocation16_spill]] %s1855_s1 }
   0x2   :  { %10 = vsyncpa [#allocation4], 0 }
   0x3   :  { %12 = vsyncpa [#allocation4 + $0x1], 0 }
   0x4   :  { %13 = vsyncpa [#allocation7], 0 }
   0x5   :  { %14 = vsyncpa [#allocation10], 0 }
   0x6   :  { %15 = vsyncpa [#allocation5], 0 }
   0x7   :  { %17 = vsyncpa [#allocation5 + $0x1], 0  ;;  %s1658_s18 = smov 0   ;;  %s1660_s19 = smov 0  }
   0x8   :  { %s1662_s20 = smov 0   ;;  %s1664_s21 = smov 0  }
   0x9   :  { %s1666_s22 = smov 0   ;;  %s1668_s23 = smov 0  }
   0xa LB: > { %s1116_s24 = sadd.s32 4294967295, %s1616_s23   ;;  %s1117_s25 = sadd.s32 4294967294, %s1616_s23   ;;  %s1616_s23 = sphi %s1668_s23, %s23_s23   ;;  %s1612_s22 = sphi %s1666_s22, %s1883_s22   ;;  %s1608_s21 = sphi %s1664_s21, %s1882_s21   ;;  %s1604_s20 = sphi %s1662_s20, %s1881_s20   ;;  %s1600_s19 = sphi %s1660_s19, %s1880_s19   ;;  %s1596_s18 = sphi %s1658_s18, %s1879_s18  }
   0xb   : > { %p55_p0 = scmp.ne.s32.totalorder %s1600_s19, %s1596_s18  ;;  %p1692_p1 = scmp.eq.s32.totalorder %s1116_s24, 0 }
   0xc   : > { %p1696_p2 = scmp.eq.s32.totalorder %s1116_s24, 1  ;;  %p184_p3 = scmp.eq.s32.totalorder %s1117_s25, 1 }
   0xd   : > { %s1865_s26 = scalar_select %p1692_p1, 1, 0 }
   0xe   : > { %p1702_p4 = por %p1692_p1, %p55_p0  ;;  %p1118_p5 = scmp.ge.s32.totalorder %s1616_s23, 1 }
   0xf   : > { %p1707_p6 = por %p184_p3, %p55_p0  ;;  %p191_p7 = scmp.lt.s32.totalorder %s1616_s23, 3 }
  0x10   : > { %s1867_s28 = scalar_select %p1702_p4, 1, 0 }
  0x11   : > { %s1868_s29 = scalar_select %p1707_p6, 1, 0 }
  0x12   : > { %p1712_p8 = pnand %p1118_p5, %p191_p7  ;;  %s1618_s6 = smov [#allocation6]  }
  0x13   : > { %s206_s7 = sshll.u32 %s1618_s6, 4  ;;  %s1619_s9 = smov [#allocation8]   ;;  %s207_s7 = int_to_ptr.vmem [resolvable:$true] %s206_s7 }
  0x14   : > { %s1869_s30 = scalar_select %p1712_p8, 1, 0 }
  0x15   : > { %p1260_p9 = pneg %p1712_p8  ;;  %s223_s10 = sshll.u32 %s1619_s9, 4  ;;  %s224_s10 = int_to_ptr.vmem [resolvable:$true] %s223_s10 }
  0x16   : > { %s1620_s11 = smov [#allocation9]   ;;  %s1433_s13 = scalar_lea.vmem %s207_s7, 4096 }
  0x17   : > { %p1721_p11 = pnand %p1260_p9, %p1692_p1  ;;  %s236_s12 = sshll.u32 %s1620_s11, 4  ;;  %s237_s12 = int_to_ptr.vmem [resolvable:$true] %s236_s12 }
  0x18   : > { %p1434_p13 = scmp.ne.s32.totalorder %s207_s7, %s1433_s13  ;;  %p1441_p5 = scmp.lt.s32.totalorder %s207_s7, %s207_s7 }
  0x19   : > { %p1424_p12 = pneg %p1721_p11  ;;  %p1442_p7 = scmp.lt.s32.totalorder %s1433_s13, %s1433_s13 }
  0x1b   : > { %p1436_p0 = pnand %p1434_p13, %p1424_p12  ;;  %p1443_p9 = por %p1442_p7, %p1441_p5 }
  0x1d   : > { %p1437_p3 = pneg %p1436_p0 }
  0x1f   : > { %p1444_p10 = pnand %p1443_p9, %p1437_p3 }
  0x21   : > { %1447 = shalt.err (!%p1444_p10)
}
  0x22   : > { %s1621_s14 = smov 256   ;;  %s1622_s15 = smov 16  }
  0x23   : > { %s1871_s1 = sld [smem:[#allocation16_spill]]  ;;  %s1459_s24 = scalar_lea.vmem %s224_s10, 64 }
  0x24   : > { %p1460_p6 = scmp.ne.s32.totalorder %s224_s10, %s1459_s24  ;;  %p1467_p1 = scmp.lt.s32.totalorder %s224_s10, %s224_s10 }
  0x25   : > { %p1468_p4 = scmp.lt.s32.totalorder %s1459_s24, %s1459_s24 }
  0x26   : > { %p1462_p13 = pnand %p1460_p6, %p1424_p12 }
  0x27   : > { %p1469_p5 = por %p1468_p4, %p1467_p1 }
  0x28   : > { %p1463_p0 = pneg %p1462_p13 }
  0x29   : > { %1263 = dma.hbm_to_vmem [thread:$0]  (!%p1721_p11), %s1871_s1, 4096, %s207_s7, [#allocation7], %s1621_s14, %s1621_s14, %s1622_s15  }
  0x2a   : > { %p1470_p3 = pnand %p1469_p5, %p1463_p0 }
  0x2c   : > { %1473 = shalt.err (!%p1470_p3)
}
  0x2d   : > { %1266 = dma.hbm_to_vmem [thread:$0]  (!%p1721_p11), %s1856_s2, 64, %s224_s10, [#allocation7]  }
  0x2e   : > { %s1485_s7 = scalar_lea.vmem %s237_s12, 4096  ;;  %p1493_p9 = scmp.lt.s32.totalorder %s237_s12, %s237_s12 }
  0x2f   : > { %p1486_p10 = scmp.ne.s32.totalorder %s237_s12, %s1485_s7  ;;  %p1494_p13 = scmp.lt.s32.totalorder %s1485_s7, %s1485_s7 }
  0x31   : > { %p1488_p7 = pnand %p1486_p10, %p1424_p12  ;;  %p1495_p8 = por %p1494_p13, %p1493_p9 }
  0x33   : > { %p1489_p6 = pneg %p1488_p7 }
  0x35   : > { %p1496_p1 = pnand %p1495_p8, %p1489_p6 }
  0x37   : > { %1499 = shalt.err (!%p1496_p1)
}
  0x38   : > { %s1623_s9 = smov 64   ;;  %s1624_s10 = smov 4  }
  0x39   : > { %1269 = dma.hbm_to_vmem [thread:$0]  (!%p1721_p11), %s1857_s3, 4096, %s237_s12, [#allocation10], %s1623_s9, %s1623_s9, %s1624_s10  }
  0x3a   : > { %s42_s14 = sadd.s32 1, %s1604_s20  ;;  %s35_s15 = sadd.s32 1, %s1612_s22 }
  0x3b   : > { %p49_p4 = scmp.ne.s32.totalorder %s1604_s20, %s1600_s19  ;;  %p37_p8 = scmp.ge.s32.totalorder %s35_s15, 2 }
  0x3c   : > { %p50_p12 = scmp.eq.s32.totalorder %s1616_s23, 0  ;;  %p1281_p5 = scmp.lt.s32.totalorder %s1616_s23, 2 }
  0x3d   : > { %p1758_p0 = por %p1696_p2, %p49_p4  ;;  %s1885_s15 = smov (%p37_p8, %s35_s15), 0 }
  0x3e   : > { %p51_p3 = por %p50_p12, %p49_p4  ;;  %s253_s8 = sand.u32 1, %s1604_s20  }
  0x3f   : > { %s39_s17 = ssub.s32 %s1612_s22, %s1885_s15  ;;  %s1123_s12 = sshll.u32 %s253_s8, 3 }
  0x40   : > { %p40_p10 = scmp.eq.s32.totalorder %s39_s17, 0  ;;  %s1124_s24 = sshll.u32 %s1612_s22, 7 }
  0x41   : > { %s262_s27 = scalar_lea.hbm %s1854_s0, %s1124_s24  ;;  %s257_s9 = scalar_lea.vmem [#allocation3], %s1123_s12 }
  0x42   : > { %s1770_s25 = scalar_select %p40_p10, %s1604_s20, %s42_s14  }
  0x43   : > { %s264_s10 = sshll.u32 %s257_s9, 4  ;;  %p1777_p2 = pnand %p1281_p5, %p51_p3  ;;  %s265_s10 = int_to_ptr.vmem [resolvable:$true] %s264_s10 }
  0x44   : > { %s254_s13 = scalar_lea.sflag [#allocation4], %s253_s8  ;;  %s1513_s17 = scalar_lea.vmem %s265_s10, 128 }
  0x45   : > { %p1502_p11 = pneg %p1777_p2  ;;  %p1514_p7 = scmp.ne.s32.totalorder %s265_s10, %s1513_s17 }
  0x46   : > { %s1625_s14 = smov [#allocation3]  }
  0x47   : > { %p1516_p6 = pnand %p1514_p7, %p1502_p11  ;;  %s1518_s1 = sshll.u32 %s1625_s14, 4  ;;  %s1519_s1 = int_to_ptr.vmem [resolvable:$false] %s1518_s1 }
  0x48   : > { %s1520_s24 = scalar_lea.vmem %s1519_s1, 256  ;;  %p1521_p13 = scmp.lt.s32.totalorder %s265_s10, %s1519_s1 }
  0x49   : > { %p1517_p9 = pneg %p1516_p6  ;;  %p1522_p1 = scmp.lt.s32.totalorder %s1520_s24, %s1513_s17 }
  0x4b   : > { %p1523_p4 = por %p1522_p1, %p1521_p13 }
  0x4d   : > { %p1524_p8 = pnand %p1523_p4, %p1517_p9 }
  0x4f   : > { %1527 = shalt.err (!%p1524_p8)
}
  0x50   : > { %1273 = dma.hbm_to_vmem [thread:$0]  (!%p1777_p2), %s262_s27, 128, %s265_s10, %s254_s13  }
  0x51   : > { %p1874_p12 = scmp.ne.s32.totalorder %s1869_s30, 0 }
  0x52   : > { %s1788_s8 = sand.u32 (!%p1874_p12), 1, %s1600_s19   ;;  %p1875_p5 = scmp.ne.s32.totalorder (!%p1874_p12), %s1867_s28, 0 }
  0x53   : > { %273 = sbr.rel (%p1874_p12) target bundleno = 544 (0x220), region = 40  ;;  %s1126_s12 = sshll.u32 (!%p1874_p12), %s1788_s8, 3 }
  0x54   : > { %s276_s6 = scalar_lea.sflag (!%p1874_p12), [#allocation4], %s1788_s8  ;;  %s1794_s1 = scalar_lea.vmem (!%p1874_p12), [#allocation3], %s1126_s12 }
  0x58   : > { %1579 = dma.done.wait (%p1875_p5), %s276_s6, 128  }
  0x59   : > { %1581 = vsyncadd (%p1875_p5), %s276_s6, 4294967168  ;;  %p1876_p3 = scmp.ne.s32.totalorder %s1865_s26, 0 }
  0x5b   : > { %1583 = dma.done.wait (%p1876_p3), [#allocation7], 4160  }
  0x5c   : > { %1585 = vsyncadd (%p1876_p3), [#allocation7], 4294963136 }
  0x5d   : > { %1587 = dma.done.wait (%p1876_p3), [#allocation10], 4096  }
  0x5e   : > { %1589 = vsyncadd (%p1876_p3), [#allocation10], 4294963200  ;;  %v1626_v0 = vmov 0   ;;  %v1342_v1 = vld [vmem:[#allocation6 + $0xe4] ss:$16 sps:$4 sm:$0xff]   ;;  %v1390_v34 = vld [vmem:[#allocation9 + $0x78] sm:$0xff]  }
  0x5f   : > { %570 = vmatprep.mubr.bf16.mxu0 %v1626_v0  ;;  %611 = vmatprep.mubr.bf16.mxu1 %v1626_v0  ;;  %v1344_v2 = vld [vmem:[#allocation6 + $0xec] ss:$16 sps:$4 sm:$0xff]   ;;  %v1346_v3 = vld [vmem:[#allocation6 + $0xe0] ss:$16 sps:$4 sm:$0xff]   ;;  %v1347_v4 = vld [vmem:[#allocation6 + $0xe8] ss:$16 sps:$4 sm:$0xff]  }
  0x60   : > { %538 = vmatprep.subr.bf16.mxu0 %v1342_v1  ;;  %579 = vmatprep.subr.bf16.mxu1 %v1344_v2  ;;  %v1348_v5 = vld [vmem:[#allocation6 + $0xc4] ss:$16 sps:$4 sm:$0xff]   ;;  %v1350_v6 = vld [vmem:[#allocation6 + $0xcc] ss:$16 sps:$4 sm:$0xff]   ;;  %v1352_v7 = vld [vmem:[#allocation6 + $0xc0] ss:$16 sps:$4 sm:$0xff]  }
  0x61   : > { %539 = vmatpush1.bf16.msra.mxu0 %v1346_v3  ;;  %580 = vmatpush1.bf16.msra.mxu1 %v1347_v4  ;;  %v1353_v8 = vld [vmem:[#allocation6 + $0xc8] ss:$16 sps:$4 sm:$0xff]   ;;  %v1354_v9 = vld [vmem:[#allocation6 + $0xa4] ss:$16 sps:$4 sm:$0xff]   ;;  %v1356_v10 = vld [vmem:[#allocation6 + $0xac] ss:$16 sps:$4 sm:$0xff]   ;;  %v358_v3 = vlaneseq }
  0x62   : > { %540 = vmatprep.subr.bf16.mxu0 %v1348_v5  ;;  %581 = vmatprep.subr.bf16.mxu1 %v1350_v6  ;;  %v1358_v11 = vld [vmem:[#allocation6 + $0xa0] ss:$16 sps:$4 sm:$0xff]   ;;  %v1359_v12 = vld [vmem:[#allocation6 + $0xa8] ss:$16 sps:$4 sm:$0xff]   ;;  %v1360_v13 = vld [vmem:[#allocation6 + $0x84] ss:$16 sps:$4 sm:$0xff]  }
  0x63   : > { %v1362_v14 = vld [vmem:[#allocation6 + $0x8c] ss:$16 sps:$4 sm:$0xff]   ;;  %v1364_v15 = vld [vmem:[#allocation6 + $0x80] ss:$16 sps:$4 sm:$0xff]   ;;  %v1365_v16 = vld [vmem:[#allocation6 + $0x88] ss:$16 sps:$4 sm:$0xff]  }
  0x64   : > { %v1366_v17 = vld [vmem:[#allocation6 + $0x64] ss:$16 sps:$4 sm:$0xff]   ;;  %v1368_v18 = vld [vmem:[#allocation6 + $0x6c] ss:$16 sps:$4 sm:$0xff]   ;;  %v1370_v19 = vld [vmem:[#allocation6 + $0x60] ss:$16 sps:$4 sm:$0xff]  }
  0x65   : > { %541 = vmatpush1.bf16.msra.mxu0 %v1352_v7  ;;  %582 = vmatpush1.bf16.msra.mxu1 %v1353_v8  ;;  %v1371_v20 = vld [vmem:[#allocation6 + $0x68] ss:$16 sps:$4 sm:$0xff]   ;;  %v1372_v21 = vld [vmem:[#allocation6 + $0x44] ss:$16 sps:$4 sm:$0xff]   ;;  %v1374_v22 = vld [vmem:[#allocation6 + $0x4c] ss:$16 sps:$4 sm:$0xff]  }
  0x66   : > { %542 = vmatprep.subr.bf16.mxu0 %v1354_v9  ;;  %583 = vmatprep.subr.bf16.mxu1 %v1356_v10  ;;  %v1376_v23 = vld [vmem:[#allocation6 + $0x40] ss:$16 sps:$4 sm:$0xff]   ;;  %v1377_v24 = vld [vmem:[#allocation6 + $0x48] ss:$16 sps:$4 sm:$0xff]   ;;  %v1378_v25 = vld [vmem:[#allocation6 + $0x24] ss:$16 sps:$4 sm:$0xff]  }
  0x67   : > { %v1380_v26 = vld [vmem:[#allocation6 + $0x2c] ss:$16 sps:$4 sm:$0xff]   ;;  %v1382_v27 = vld [vmem:[#allocation6 + $0x20] ss:$16 sps:$4 sm:$0xff]   ;;  %v1383_v28 = vld [vmem:[#allocation6 + $0x28] ss:$16 sps:$4 sm:$0xff]  }
  0x68   : > { %v1384_v29 = vld [vmem:[#allocation6 + $0x4] ss:$16 sps:$4 sm:$0xff]   ;;  %v1386_v30 = vld [vmem:[#allocation6 + $0xc] ss:$16 sps:$4 sm:$0xff]   ;;  %v1388_v31 = vld [vmem:[#allocation6] ss:$16 sps:$4 sm:$0xff]  }
  0x69   : > { %543 = vmatpush1.bf16.msra.mxu0 %v1358_v11  ;;  %584 = vmatpush1.bf16.msra.mxu1 %v1359_v12  ;;  %v1389_v32 = vld [vmem:[#allocation6 + $0x8] ss:$16 sps:$4 sm:$0xff]   ;;  %v1391_v35 = vld [vmem:[#allocation9 + $0xf8] sm:$0xff]   ;;  %v1398_v43 = vld [vmem:[#allocation9 + $0x68] sm:$0xff]   ;;  %v359_v4 = vshrl.u32 %v358_v3, 7  ;;  %s1197_s30 = sshll.u32 %s1608_s21, 7 }
  0x6a   : > { %544 = vmatprep.subr.bf16.mxu0 %v1360_v13  ;;  %585 = vmatprep.subr.bf16.mxu1 %v1362_v14  ;;  %v322_v33 = vld [vmem:[%s1794_s1] sm:$0xff]  ;;  %v1402_v47 = vld [vmem:[#allocation9 + $0x60] sm:$0xff]   ;;  %v356_v7 = vld [vmem:[#allocation8] sm:$0xf]  ;;  %s317_s7 = scalar_lea.vmem [#allocation11], %s1126_s12  ;;  %s1001_s11 = scalar_lea.hbm %s1859_s5, %s1197_s30 }
  0x6b   : > { %v1392_v36 = vld [vmem:[#allocation9 + $0x38] sm:$0xff]   ;;  %v323_v37 = vpack.c.bf16 %v322_v33, %v322_v33  ;;  %v1394_v39 = vld [vmem:[#allocation9 + $0x70] sm:$0xff]   ;;  %v1399_v44 = vld [vmem:[#allocation9 + $0xe8] sm:$0xff]   ;;  %v360_v5 = vsub.s32 0, %v359_v4  ;;  %v368_v6 = vsub.s32 2, %v359_v4  ;;  %v364_v8 = vsub.s32 1, %v359_v4 }
  0x6c   : > { %v1393_v38 = vld [vmem:[#allocation9 + $0xb8] sm:$0xff]   ;;  %v1395_v40 = vld [vmem:[#allocation9 + $0xf0] sm:$0xff]   ;;  %v1400_v45 = vld [vmem:[#allocation9 + $0x28] sm:$0xff]   ;;  %v372_v9 = vsub.s32 3, %v359_v4  ;;  %s1003_s27 = sshll.u32 %s317_s7, 4  ;;  %s990_s13 = scalar_lea.sflag [#allocation5], %s1788_s8  ;;  %s1004_s27 = int_to_ptr.vmem [resolvable:$true] %s1003_s27 }
  0x6d   : > { %545 = vmatpush1.bf16.msra.mxu0 %v1364_v15  ;;  %586 = vmatpush1.bf16.msra.mxu1 %v1365_v16  ;;  %v1396_v41 = vld [vmem:[#allocation9 + $0x30] sm:$0xff]   ;;  %v1401_v46 = vld [vmem:[#allocation9 + $0xa8] sm:$0xff]   ;;  %v1403_v48 = vld [vmem:[#allocation9 + $0xe0] sm:$0xff]   ;;  %v361_v10 = vrot.slane %v356_v7, %v360_v5  ;;  %v369_v11 = vrot.slane %v356_v7, %v368_v6  ;;  %v365_v12 = vrot.slane %v356_v7, %v364_v8  ;;  %s1528_s17 = scalar_lea.vmem %s1004_s27, 128  ;;  %s1627_s21 = smov [#allocation11]  }
  0x6e   : > { %546 = vmatprep.subr.bf16.mxu0 %v1366_v17  ;;  %587 = vmatprep.subr.bf16.mxu1 %v1368_v18  ;;  %v1397_v42 = vld [vmem:[#allocation9 + $0xb0] sm:$0xff]   ;;  %v1404_v49 = vld [vmem:[#allocation9 + $0x20] sm:$0xff]   ;;  %v1406_v51 = vld [vmem:[#allocation9 + $0x58] sm:$0xff]   ;;  %v373_v13 = vrot.slane %v356_v7, %v372_v9  ;;  %p1529_p10 = scmp.ne.s32.totalorder %s1004_s27, %s1528_s17  ;;  %s1532_s14 = sshll.u32 %s1627_s21, 4  ;;  %s1533_s14 = int_to_ptr.vmem [resolvable:$false] %s1532_s14 }
  0x6f   : > { %v1405_v50 = vld [vmem:[#allocation9 + $0xa0] sm:$0xff]   ;;  %v1407_v52 = vld [vmem:[#allocation9 + $0xd8] sm:$0xff]   ;;  %v1410_v55 = vld [vmem:[#allocation9 + $0x50] sm:$0xff]   ;;  %s1534_s24 = scalar_lea.vmem %s1533_s14, 256  ;;  %p1535_p7 = scmp.lt.s32.totalorder %s1004_s27, %s1533_s14 }
  0x70   : > { %v1408_v53 = vld [vmem:[#allocation9 + $0x18] sm:$0xff]   ;;  %v1411_v56 = vld [vmem:[#allocation9 + $0xd0] sm:$0xff]   ;;  %v1414_v59 = vld [vmem:[#allocation9 + $0x48] sm:$0xff]   ;;  %p1530_p2 = pnand %p1529_p10, %p1758_p0  ;;  %p1536_p6 = scmp.lt.s32.totalorder %s1534_s24, %s1528_s17 }
  0x71   : > { %547 = vmatpush1.bf16.msra.mxu0 %v1370_v19  ;;  %588 = vmatpush1.bf16.msra.mxu1 %v1371_v20  ;;  %v1409_v54 = vld [vmem:[#allocation9 + $0x98] sm:$0xff]   ;;  %v1412_v57 = vld [vmem:[#allocation9 + $0x10] sm:$0xff]   ;;  %v1415_v60 = vld [vmem:[#allocation9 + $0xc8] sm:$0xff]  }
  0x72   : > { %548 = vmatprep.subr.bf16.mxu0 %v1372_v21  ;;  %589 = vmatprep.subr.bf16.mxu1 %v1374_v22  ;;  %v1413_v58 = vld [vmem:[#allocation9 + $0x90] sm:$0xff]   ;;  %v1416_v61 = vld [vmem:[#allocation9 + $0x8] sm:$0xff]   ;;  %v1418_v63 = vld [vmem:[#allocation9 + $0x40] sm:$0xff]   ;;  %p1531_p11 = pneg %p1530_p2  ;;  %p1537_p9 = por %p1536_p6, %p1535_p7 }
  0x73   : > { %v1417_v62 = vld [vmem:[#allocation9 + $0x88] sm:$0xff]   ;;  %v1419_v0 = vld [vmem:[#allocation9 + $0xc0] sm:$0xff]  }
  0x74   : > { %v1420_v1 = vld [vmem:[#allocation9] sm:$0xff]   ;;  %p1538_p13 = pnand %p1537_p9, %p1531_p11 }
  0x75   : > { %549 = vmatpush1.bf16.msra.mxu0 %v1376_v23  ;;  %590 = vmatpush1.bf16.msra.mxu1 %v1377_v24  ;;  %v1421_v2 = vld [vmem:[#allocation9 + $0x80] sm:$0xff]  }
  0x76   : > { %550 = vmatprep.subr.bf16.mxu0 %v1378_v25  ;;  %591 = vmatprep.subr.bf16.mxu1 %v1380_v26 }
  0x79   : > { %551 = vmatpush1.bf16.msra.mxu0 %v1382_v27  ;;  %592 = vmatpush1.bf16.msra.mxu1 %v1383_v28 }
  0x7a   : > { %552 = vmatprep.subr.bf16.mxu0 %v1384_v29  ;;  %593 = vmatprep.subr.bf16.mxu1 %v1386_v30 }
  0x7d   : > { %553 = vmatpush1.bf16.msra.mxu0 %v1388_v31  ;;  %594 = vmatpush1.bf16.msra.mxu1 %v1389_v32 }
  0x7e   : > { %1200 = vmatprep.subr.bf16.mxu0 %v1390_v34  ;;  %1222 = vmatprep.subr.bf16.mxu1 %v1391_v35 }
  0x80   : > { %571 = vmatmul.mubr.bf16.vlgmr.msra.gmra.mxu0 %v323_v37  ;;  %612 = vmatmul.mubr.bf16.vlgmr.msra.gmra.mxu1 %v323_v37 }
  0x81   : > { %1201 = vmatpush3.bf16.msra.mxu0 %v1392_v36  ;;  %1223 = vmatpush3.bf16.msra.mxu1 %v1393_v38 }
  0x82   : > { %1202 = vmatprep.subr.bf16.mxu0 %v1394_v39  ;;  %1224 = vmatprep.subr.bf16.mxu1 %v1395_v40  ;;  %v1195_v40 = vld [vmem:[%s1858_s4] ss:$0 sm:$0xff] }
  0x85   : > { %1203 = vmatpush3.bf16.msra.mxu0 %v1396_v41  ;;  %1225 = vmatpush3.bf16.msra.mxu1 %v1397_v42 }
  0x86   : > { %1204 = vmatprep.subr.bf16.mxu0 %v1398_v43  ;;  %1226 = vmatprep.subr.bf16.mxu1 %v1399_v44 }
  0x89   : > { %1205 = vmatpush3.bf16.msra.mxu0 %v1400_v45  ;;  %1227 = vmatpush3.bf16.msra.mxu1 %v1401_v46 }
  0x8a   : > { %1206 = vmatprep.subr.bf16.mxu0 %v1402_v47  ;;  %1228 = vmatprep.subr.bf16.mxu1 %v1403_v48 }
  0x8d   : > { %1207 = vmatpush3.bf16.msra.mxu0 %v1404_v49  ;;  %1229 = vmatpush3.bf16.msra.mxu1 %v1405_v50 }
  0x8e   : > { %1208 = vmatprep.subr.bf16.mxu0 %v1406_v51  ;;  %1230 = vmatprep.subr.bf16.mxu1 %v1407_v52 }
  0x91   : > { %1209 = vmatpush3.bf16.msra.mxu0 %v1408_v53  ;;  %1231 = vmatpush3.bf16.msra.mxu1 %v1409_v54 }
  0x92   : > { %1210 = vmatprep.subr.bf16.mxu0 %v1410_v55  ;;  %1232 = vmatprep.subr.bf16.mxu1 %v1411_v56 }
  0x95   : > { %1211 = vmatpush3.bf16.msra.mxu0 %v1412_v57  ;;  %1233 = vmatpush3.bf16.msra.mxu1 %v1413_v58 }
  0x96   : > { %1212 = vmatprep.subr.bf16.mxu0 %v1414_v59  ;;  %1234 = vmatprep.subr.bf16.mxu1 %v1415_v60 }
  0x99   : > { %1213 = vmatpush3.bf16.msra.mxu0 %v1416_v61  ;;  %1235 = vmatpush3.bf16.msra.mxu1 %v1417_v62 }
  0x9a   : > { %1214 = vmatprep.subr.bf16.mxu0 %v1418_v63  ;;  %1236 = vmatprep.subr.bf16.mxu1 %v1419_v0 }
  0x9d   : > { %1215 = vmatpush3.bf16.msra.mxu0 %v1420_v1  ;;  %1237 = vmatpush3.bf16.msra.mxu1 %v1421_v2 }
 0x140   : > { %v572_v14 = vpop.f32.mrf.mxu0  ;;  %v613_v15 = vpop.f32.mrf.mxu1 }
 0x141   : > { %v573_v16 = vadd.f32 %v572_v14, %v361_v10  ;;  %v614_v17 = vadd.f32 %v613_v15, %v369_v11 }
 0x142   : > { %v574_v18 = vpop.f32.mrf.mxu0  ;;  %v615_v19 = vpop.f32.mrf.mxu1 }
 0x143   : > { %v575_v20 = vadd.f32 %v574_v18, %v365_v12  ;;  %v616_v21 = vadd.f32 %v615_v19, %v373_v13  ;;  %v620_v22 = vmax.f32 %v573_v16, 0.0  ;;  %v622_v23 = vmax.f32 %v614_v17, 0.0 }
 0x144   : > { %v576_v24 = vpop.f32.mrf.mxu0  ;;  %v617_v25 = vpop.f32.mrf.mxu1 }
 0x145   : > { %v621_v26 = vmax.f32 %v575_v20, 0.0  ;;  %v623_v27 = vmax.f32 %v616_v21, 0.0  ;;  %v624_v32 = vpack.c.bf16 %v620_v22, %v620_v22  ;;  %v626_v33 = vpack.c.bf16 %v622_v23, %v622_v23 }
 0x146   : > { %v577_v28 = vpop.f32.mrf.mxu0  ;;  %v618_v29 = vpop.f32.mrf.mxu1 }
 0x147   : > { %v625_v30 = vpack.c.bf16 %v621_v26, %v621_v26  ;;  %v627_v31 = vpack.c.bf16 %v623_v27, %v623_v27 }
 0x149   : > { %916 = vmatprep.mubr.bf16.mxu0 %v625_v30  ;;  %956 = vmatprep.mubr.bf16.mxu1 %v627_v31 }
 0x14a   : > { %917 = vmatmul.mubr.bf16.vlgmr.msra.gmra.mxu0 %v624_v32  ;;  %957 = vmatmul.mubr.bf16.vlgmr.msra.gmra.mxu1 %v626_v33 }
 0x20a   : > { %v1216_v34 = vpop.f32.mrf.mxu0  ;;  %v1238_v35 = vpop.f32.mrf.mxu1 }
 0x20c   : > { %v1217_v36 = vpop.f32.mrf.mxu0  ;;  %v1239_v37 = vpop.f32.mrf.mxu1 }
 0x20d   : > { %v1218_v38 = vadd.f32 %v1217_v36, %v1216_v34  ;;  %v1240_v39 = vadd.f32 %v1239_v37, %v1238_v35 }
 0x20e   : > { %v1219_v41 = vpop.f32.mrf.mxu0  ;;  %v1241_v42 = vpop.f32.mrf.mxu1 }
 0x20f   : > { %v959_v43 = vadd.f32 %v1240_v39, %v1218_v38 }
 0x210   : > { %v1220_v44 = vpop.f32.mrf.mxu0  ;;  %v1242_v45 = vpop.f32.mrf.mxu1 }
 0x211   : > { %v987_v46 = vadd.f32 %v1195_v40, %v959_v43 }
 0x213   : > { %988 = vst [vmem:[%s317_s7] sm:$0xff] %v987_v46 }
 0x214   : > { %1541 = shalt.err (!%p1538_p13)
}
 0x215   : > { %s1542_s12 = scalar_lea.hbm %s1001_s11, 128  ;;  %s1546_s1 = scalar_lea.hbm %s1859_s5, 256 }
 0x216   : > { %p1543_p1 = scmp.ne.s32.totalorder %s1001_s11, %s1542_s12  ;;  %p1547_p12 = scmp.lt.s32.totalorder %s1001_s11, %s1859_s5 }
 0x217   : > { %p1548_p5 = scmp.lt.s32.totalorder %s1546_s1, %s1542_s12 }
 0x218   : > { %p1544_p4 = pnand %p1543_p1, %p1758_p0 }
 0x219   : > { %p1549_p3 = por %p1548_p5, %p1547_p12 }
 0x21a   : > { %p1545_p8 = pneg %p1544_p4 }
 0x21c   : > { %p1550_p10 = pnand %p1549_p3, %p1545_p8 }
 0x21e   : > { %1553 = shalt.err (!%p1550_p10)
}
 0x21f   : > { %1258 = dma.vmem_to_hbm [thread:$0]  (%p1758_p0), %s1004_s27, 128, %s1001_s11, %s990_s13  }
 0x220 PF: > { %s1015_s30 = sand.u32 1, %s1596_s18   ;;  %p1877_p2 = scmp.ne.s32.totalorder %s1868_s29, 0 }
 0x221   : > { %p1878_p11 = scmp.ge.s32.totalorder %s1616_s23, 2  ;;  %s1016_s7 = scalar_lea.sflag [#allocation5], %s1015_s30 }
 0x223   : > { %p1275_p7 = pnand %p1878_p11, %p1877_p2 }
 0x225   : > { %p1276_p6 = pneg %p1275_p7 }
 0x227   : > { %1591 = dma.done.wait (%p1276_p6), %s1016_s7, 128  }
 0x228   : > { %1593 = vsyncadd (%p1276_p6), %s1016_s7, 4294967168  ;;  %s23_s23 = sadd.s32 1, %s1616_s23   ;;  %s1879_s18 = smov %s1600_s19 }
 0x229   : > { %p20_p9 = scmp.ge.s32.totalorder %s23_s23, 4   ;;  %s1880_s19 = smov %s1604_s20 }
 0x22a   : > { %s1881_s20 = smov %s1770_s25  ;;  %s1882_s21 = smov %s1612_s22 }
 0x22b   : > { %s1883_s22 = smov %s1885_s15  ;;  %22 = sbr.rel (!%p20_p9) target bundleno = 10 (0xa), region = 112 }
 0x230   :  { %1021 = vsyncpa [#allocation4], 1 }
 0x231   :  { %1023 = vsyncpa [#allocation4 + $0x1], 1 }
 0x232   :  { %1024 = vsyncpa [#allocation7], 1 }
 0x233   :  { %1025 = vsyncpa [#allocation10], 1 }
 0x234   :  { %1026 = vsyncpa [#allocation5], 1 }
 0x235   :  { %1028 = vsyncpa [#allocation5 + $0x1], 1 }

</bundles_post_ra>
